<compile_context>
chip_gen: v7x
topology: tpu7x:2x2x1
jax: 0.10.0
libtpu: 0.0.40
codegen_flags: <defaults>
</compile_context>

<pallas_src>
import jax
import jax.numpy as jnp
from jax.experimental import pallas as pl
from jax.experimental.pallas import tpu as pltpu

_EPS = 1e-5


# ----------------------------------------------------------------------------
# Kernel
# ----------------------------------------------------------------------------
def _make_layernorm_kernel(has_bias):
    def _body(x_ref, w_ref, b_ref, o_ref):
        x = x_ref[...].astype(jnp.float32)            # (tile_rows, C)
        w = w_ref[...].astype(jnp.float32)            # (1, C), broadcasts
        # One-pass statistics in f32: var = E[x^2] - mean^2 (clamped >= 0 to
        # guard against tiny negative cancellation).
        mean = jnp.mean(x, axis=-1, keepdims=True)
        mean_sq = jnp.mean(x * x, axis=-1, keepdims=True)
        var = jnp.maximum(mean_sq - mean * mean, 0.0)
        y = (x - mean) * jax.lax.rsqrt(var + _EPS) * w
        if b_ref is not None:
            y = y + b_ref[...].astype(jnp.float32)
        o_ref[...] = y.astype(o_ref.dtype)

    if has_bias:
        def kernel(x_ref, w_ref, b_ref, o_ref):
            _body(x_ref, w_ref, b_ref, o_ref)
    else:
        def kernel(x_ref, w_ref, o_ref):
            _body(x_ref, w_ref, None, o_ref)
    return kernel


# ----------------------------------------------------------------------------
# Sizing helpers
# ----------------------------------------------------------------------------
def _round_up(v, m):
    return ((v + m - 1) // m) * m


def _sublane_multiple(dtype):
    # f32 -> 8, bf16/f16 -> 16, int8/fp8 -> 32 (sub-32-bit packs along sublanes).
    item = jnp.dtype(dtype).itemsize
    return max(8, 32 // max(item, 1))


def _vmem_capacity_bytes():
    try:
        info = pltpu.get_tpu_info()
        cap = getattr(info, "vmem_capacity_bytes", None)
        if cap:
            return int(cap)
    except Exception:
        pass
    return 64 << 20  # conservative fallback (v7x-sized)


def _per_row_bytes(c, in_item, out_item):
    # Double-buffered input tile + double-buffered output tile + ~3 tile-sized
    # f32 temporaries the kernel materializes (upcast x, x*x / xc, y).
    return c * (2 * in_item + 2 * out_item + 3 * 4)


def _pick_tile_rows(num_rows, c, in_item, out_item, sublane, budget_bytes):
    per_row = _per_row_bytes(c, in_item, out_item)
    t = budget_bytes // max(per_row, 1)
    t = max(sublane, (t // sublane) * sublane)
    # No point tiling past the (sublane-rounded) total row count.
    t = min(t, max(sublane, _round_up(num_rows, sublane)))
    return int(t)


def _dimension_semantics():
    # v7x has 2 TensorCores per chip: shard the row grid across both cores.
    # Older generations (1 TC) keep the plain "parallel" annotation.
    try:
        kind = jax.devices()[0].device_kind.lower()
    except Exception:
        kind = ""
    if "v7" in kind:
        return (pltpu.CORE_PARALLEL,)
    return ("parallel",)


# ----------------------------------------------------------------------------
# Wrapper
# ----------------------------------------------------------------------------
def layer_norm_pallas(x, weight, bias=None, *, tile_rows=None):
    """LayerNorm over the last dim of x (any leading shape), eps=1e-5."""
    orig_shape = x.shape
    C = orig_shape[-1]
    x2 = x.reshape(-1, C)
    R = x2.shape[0]
    has_bias = bias is not None

    w2 = weight.reshape(1, C)
    operands = [x2, w2]
    if has_bias:
        operands.append(bias.reshape(1, C))

    out_dtype = x.dtype
    in_item = jnp.dtype(x2.dtype).itemsize
    out_item = jnp.dtype(out_dtype).itemsize
    sublane = _sublane_multiple(x2.dtype)

    # Generation-aware VMEM budgeting.
    cap = _vmem_capacity_bytes()
    budget = min((cap * 3) // 5, 48 << 20)        # ~38 MiB on v7x, 48 MiB on v5e/v6e
    limit_cap = min((cap * 13) // 16, 100 << 20)  # headroom for Mosaic scratch/meta

    if tile_rows is None:
        tile_rows = _pick_tile_rows(R, C, in_item, out_item, sublane, budget)

    grid = (pl.cdiv(R, tile_rows),)

    # Full-extent feature dim: legal even when C % 128 != 0, and rows are
    # independent so the ragged tail block's discarded rows are harmless.
    row_spec = pl.BlockSpec((tile_rows, C), lambda i: (i, 0))
    param_spec = pl.BlockSpec((1, C), lambda i: (0, 0))
    in_specs = [row_spec, param_spec] + ([param_spec] if has_bias else [])

    needed = (tile_rows * _per_row_bytes(C, in_item, out_item)
              + (2 if has_bias else 1) * 2 * C * jnp.dtype(w2.dtype).itemsize)
    vmem_limit = int(min(max(needed * 5 // 4 + (4 << 20), 32 << 20), limit_cap))

    kernel = _make_layernorm_kernel(has_bias)

    out = pl.pallas_call(
        kernel,
        out_shape=jax.ShapeDtypeStruct((R, C), out_dtype),
        grid_spec=pltpu.PrefetchScalarGridSpec(
            num_scalar_prefetch=0,
            grid=grid,
            in_specs=in_specs,
            out_specs=row_spec,
        ),
        compiler_params=pltpu.CompilerParams(
            dimension_semantics=_dimension_semantics(),
            vmem_limit_bytes=vmem_limit,
        ),
    )(*operands)

    return out.reshape(orig_shape)


# ----------------------------------------------------------------------------
# Self-test
# ----------------------------------------------------------------------------
if __name__ == "__main__":
    key = jax.random.PRNGKey(0)

    def ref_ln(x, w, b):
        xf = x.astype(jnp.float32)
        mean = jnp.mean(xf, axis=-1, keepdims=True)
        var = jnp.mean((xf - mean) ** 2, axis=-1, keepdims=True)
        y = (xf - mean) * jax.lax.rsqrt(var + _EPS) * w.astype(jnp.float32)
        if b is not None:
            y = y + b.astype(jnp.float32)
        return y

    k1, k2, k3, k4 = jax.random.split(key, 4)

    # Case 1: C=32 (not lane-aligned -> masked-store path, no padding),
    # affine weight + bias exactly as LayerNorm(ndim, bias=True) init.
    B, T, C = 2, 8, 32
    x = jax.random.normal(k1, (B, T, C), dtype=jnp.float32)
    w = jnp.ones((C,), dtype=jnp.float32)
    b = jnp.zeros((C,), dtype=jnp.float32)
    y = jax.block_until_ready(layer_norm_pallas(x, w, b))
    assert jnp.allclose(y, ref_ln(x, w, b), atol=1e-5, rtol=1e-5), \
        "mismatch (bias, C=32)"

    # Case 2: lane-aligned C=128 (fast path) with bias=None
    # (LayerNorm(ndim, bias=False)).
    C2 = 128
    x2 = jax.random.normal(k2, (B, T, C2), dtype=jnp.float32)
    w2 = jnp.ones((C2,), dtype=jnp.float32)
    y2 = jax.block_until_ready(layer_norm_pallas(x2, w2, None))
    assert jnp.allclose(y2, ref_ln(x2, w2, None), atol=1e-5, rtol=1e-5), \
        "mismatch (no-bias, C=128)"

    # Case 3: ragged row grid (R=21, tile_rows=8 -> last block partially valid).
    C3 = 64
    x3 = jax.random.normal(k3, (3, 7, C3), dtype=jnp.float32)
    w3 = jnp.ones((C3,), dtype=jnp.float32)
    b3 = jnp.zeros((C3,), dtype=jnp.float32)
    y3 = jax.block_until_ready(layer_norm_pallas(x3, w3, b3, tile_rows=8))
    assert jnp.allclose(y3, ref_ln(x3, w3, b3), atol=1e-5, rtol=1e-5), \
        "mismatch (ragged rows)"

    # Case 4: bf16 input on the wire (stats still f32 in-kernel), f32 params.
    C4 = 256
    x4 = jax.random.normal(k4, (B, T, C4), dtype=jnp.bfloat16)
    w4 = jnp.ones((C4,), dtype=jnp.float32)
    b4 = jnp.zeros((C4,), dtype=jnp.float32)
    y4 = jax.block_until_ready(layer_norm_pallas(x4, w4, b4))
    assert jnp.allclose(y4.astype(jnp.float32), ref_ln(x4, w4, b4),
                        atol=2e-2, rtol=2e-2), "mismatch (bf16)"

    print("KERNEL_OK")
</pallas_src>

<mosaic_0001>
module attributes {stable_mosaic.version = 11 : i64} {
  func.func @kernel(%arg0: i32, %arg1: memref<16x32xf32, #tpu.memory_space<vmem>>, %arg2: memref<1x32xf32, #tpu.memory_space<vmem>>, %arg3: memref<1x32xf32, #tpu.memory_space<vmem>>, %arg4: memref<16x32xf32, #tpu.memory_space<vmem>>) attributes {dimension_semantics = [#tpu.dimension_semantics<parallel>], iteration_bounds = array<i64: 1>, scalar_prefetch = 0 : i64, scratch_operands = 0 : i64, tpu.core_type = #tpu.core_type<tc>, window_params = [{transform_indices = @transform_0, window_bounds = array<i64: 16, 32>}, {pipeline_mode = #tpu.pipeline_mode<synchronous>, transform_indices = @transform_1, window_bounds = array<i64: 1, 32>}, {pipeline_mode = #tpu.pipeline_mode<synchronous>, transform_indices = @transform_2, window_bounds = array<i64: 1, 32>}, {transform_indices = @transform_3, window_bounds = array<i64: 16, 32>}]} {
    %c0 = arith.constant 0 : index
    %c0_0 = arith.constant 0 : index
    %0 = vector.load %arg1[%c0, %c0_0] : memref<16x32xf32, #tpu.memory_space<vmem>>, vector<16x32xf32>
    %c0_1 = arith.constant 0 : index
    %c0_2 = arith.constant 0 : index
    %1 = vector.load %arg2[%c0_1, %c0_2] : memref<1x32xf32, #tpu.memory_space<vmem>>, vector<1x32xf32>
    %cst = arith.constant dense<0.000000e+00> : vector<16xf32>
    %2 = vector.multi_reduction <add>, %0, %cst [1] : vector<16x32xf32> to vector<16xf32>
    %3 = vector.shape_cast %2 : vector<16xf32> to vector<16x1xf32>
    %cst_3 = arith.constant 3.200000e+01 : f32
    %4 = vector.broadcast %cst_3 : f32 to vector<16x1xf32>
    %5 = arith.divf %3, %4 : vector<16x1xf32>
    %6 = arith.mulf %0, %0 : vector<16x32xf32>
    %cst_4 = arith.constant dense<0.000000e+00> : vector<16xf32>
    %7 = vector.multi_reduction <add>, %6, %cst_4 [1] : vector<16x32xf32> to vector<16xf32>
    %8 = vector.shape_cast %7 : vector<16xf32> to vector<16x1xf32>
    %cst_5 = arith.constant 3.200000e+01 : f32
    %9 = vector.broadcast %cst_5 : f32 to vector<16x1xf32>
    %10 = arith.divf %8, %9 : vector<16x1xf32>
    %11 = arith.mulf %5, %5 : vector<16x1xf32>
    %12 = arith.subf %10, %11 : vector<16x1xf32>
    %cst_6 = arith.constant 0.000000e+00 : f32
    %13 = vector.broadcast %cst_6 : f32 to vector<16x1xf32>
    %14 = arith.maximumf %12, %13 : vector<16x1xf32>
    %15 = vector.broadcast %5 : vector<16x1xf32> to vector<16x32xf32>
    %16 = arith.subf %0, %15 : vector<16x32xf32>
    %cst_7 = arith.constant 9.99999974E-6 : f32
    %17 = vector.broadcast %cst_7 : f32 to vector<16x1xf32>
    %18 = arith.addf %14, %17 : vector<16x1xf32>
    %19 = math.rsqrt %18 : vector<16x1xf32>
    %20 = vector.broadcast %19 : vector<16x1xf32> to vector<16x32xf32>
    %21 = arith.mulf %16, %20 : vector<16x32xf32>
    %22 = vector.broadcast %1 : vector<1x32xf32> to vector<16x32xf32>
    %23 = arith.mulf %21, %22 : vector<16x32xf32>
    %c0_8 = arith.constant 0 : index
    %c0_9 = arith.constant 0 : index
    %24 = vector.load %arg3[%c0_8, %c0_9] : memref<1x32xf32, #tpu.memory_space<vmem>>, vector<1x32xf32>
    %25 = vector.broadcast %24 : vector<1x32xf32> to vector<16x32xf32>
    %26 = arith.addf %23, %25 : vector<16x32xf32>
    %c0_10 = arith.constant 0 : index
    %c0_11 = arith.constant 0 : index
    %27 = vector.load %arg4[%c0_10, %c0_11] : memref<16x32xf32, #tpu.memory_space<vmem>>, vector<16x32xf32>
    tpu.vector_store %arg4[%c0_10, %c0_11], %26 {strides = array<i32>} : memref<16x32xf32, #tpu.memory_space<vmem>>, vector<16x32xf32>,
    return
  }
  func.func @transform_0(%arg0: i32) -> (i32, i32) {
    %c0_i32 = arith.constant 0 : i32
    %c0_i32_0 = arith.constant 0 : i32
    return %arg0, %c0_i32 : i32, i32
  }
  func.func @transform_1(%arg0: i32) -> (i32, i32) {
    %c0_i32 = arith.constant 0 : i32
    %c0_i32_0 = arith.constant 0 : i32
    %c0_i32_1 = arith.constant 0 : i32
    return %c0_i32, %c0_i32_0 : i32, i32
  }
  func.func @transform_2(%arg0: i32) -> (i32, i32) {
    %c0_i32 = arith.constant 0 : i32
    %c0_i32_0 = arith.constant 0 : i32
    %c0_i32_1 = arith.constant 0 : i32
    return %c0_i32, %c0_i32_0 : i32, i32
  }
  func.func @transform_3(%arg0: i32) -> (i32, i32) {
    %c0_i32 = arith.constant 0 : i32
    %c0_i32_0 = arith.constant 0 : i32
    return %arg0, %c0_i32 : i32, i32
  }
}

</mosaic_0001>

<bundles_post_ra>
// kernel: tpu_custom_call.1
= control target key start
LH: loop header
LB: loop body
LE: loop exit
PB: predicated region body
PF: predicated region fallthrough
CT: control target
= control target key end

     0   :  { %8 = vsyncpa [#allocation3], 0  ;;  %s226_s0 = inlined_call_operand.hbm [shape: f32[16,32], index: 0, kind: input, shape index: {}]   ;;  %s227_s1 = inlined_call_operand.vmem [shape: f32[1,32], index: 1, kind: input, shape index: {}]   ;;  %s228_s2 = inlined_call_operand.vmem [shape: f32[1,32], index: 2, kind: input, shape index: {}]   ;;  %s229_s3 = inlined_call_operand.hbm [shape: f32[16,32], index: 3, kind: output, shape index: {}]  }
   0x1   :  { %9 = vsyncpa [#allocation4], 0  ;;  %s160_s12 = smov [#allocation2]   ;;  %s112_s16 = scalar_lea.hbm %s226_s0, 256 }
   0x2   :  { %s15_s13 = sshll.u32 %s160_s12, 4  ;;  %p113_p0 = scmp.ne.s32.totalorder %s226_s0, %s112_s16  ;;  %s16_s13 = int_to_ptr.vmem [resolvable:$true] %s15_s13 }
   0x3   :  { %p116_p1 = scmp.lt.u32.totalorder %s112_s16, %s226_s0 }
   0x5   :  { %p118_p2 = pnand %p116_p1, %p113_p0 }
   0x7   :  { %121 = shalt.err (!%p118_p2)
}
   0x8   :  { %s122_s21 = scalar_lea.vmem %s16_s13, 256  ;;  %p127_p4 = scmp.lt.s32.totalorder %s16_s13, %s16_s13 }
   0x9   :  { %p123_p3 = scmp.ne.s32.totalorder %s16_s13, %s122_s21  ;;  %p128_p5 = scmp.lt.s32.totalorder %s122_s21, %s122_s21 }
   0xb   :  { %p129_p6 = por %p128_p5, %p127_p4 }
   0xd   :  { %p130_p7 = pnand %p129_p6, %p123_p3 }
   0xf   :  { %133 = shalt.err (!%p130_p7)
}
  0x10   :  { %s161_s22 = smov 128   ;;  %s162_s23 = smov 8  }
  0x11   :  { %21 = dma.hbm_to_vmem [thread:$0]  %s226_s0, 256, %s16_s13, [#allocation3], %s161_s22, %s161_s22, %s162_s23  }
  0x12   :  { %156 = dma.done.wait [#allocation3], 256  }
  0x13   :  { %157 = vsyncadd [#allocation3], 4294967040  ;;  %vm32_vm0 = vcmask 261120   ;;  %v29_v0 = vld [vmem:[#allocation2] sm:$0xff]  ;;  %v30_v1 = vld [vmem:[#allocation2 + $0x8] sm:$0xff]  ;;  %s163_s29 = smov [#allocation5]  }
  0x14   :  { %v33_v2 = vsel %vm32_vm0, %v29_v0, 0.0  ;;  %v42_v3 = vmul.f32 %v29_v0, %v29_v0  ;;  %v43_v4 = vmul.f32 %v30_v1, %v30_v1  ;;  %v36_v6 = vsel %vm32_vm0, %v30_v1, 0.0  ;;  %v102_v26 = vld [vmem:[%s227_s1] ss:$0 sm:$0xff]  ;;  %s90_s30 = sshll.u32 %s163_s29, 4  ;;  %s91_s30 = int_to_ptr.vmem [resolvable:$true] %s90_s30 }
  0x15   :  { %34 = vadd.xlane.f32.xlu0 %v33_v2  ;;  %v103_v28 = vld [vmem:[%s228_s2] ss:$0 sm:$0xff]  ;;  %s134_s1 = scalar_lea.vmem %s91_s30, 256  ;;  %p139_p9 = scmp.lt.s32.totalorder %s91_s30, %s91_s30 }
  0x16   :  { %v44_v5 = vsel %vm32_vm0, %v42_v3, 0.0  ;;  %v47_v7 = vsel %vm32_vm0, %v43_v4, 0.0  ;;  %p135_p8 = scmp.ne.s32.totalorder %s91_s30, %s134_s1  ;;  %p140_p10 = scmp.lt.s32.totalorder %s134_s1, %s134_s1 }
  0x17   :  { %45 = vadd.xlane.f32.xlu1 %v44_v5 }
  0x18   :  { %p141_p11 = por %p140_p10, %p139_p9 }
  0x19   :  { %37 = vadd.xlane.f32.xlu0 %v36_v6 }
  0x1a   :  { %p142_p12 = pnand %p141_p11, %p135_p8 }
  0x1b   :  { %48 = vadd.xlane.f32.xlu1 %v47_v7 }
  0xa2   :  { %v35_v8 = vpop.xlane.xlu0 %34 }
  0xa3   :  { %v40_v9 = vmul.f32 0.03125, %v35_v8 }
  0xa4   :  { %v46_v10 = vpop.xlane.xlu1 %45 }
  0xa5   :  { %v52_v11 = vmul.f32 %v40_v9, %v40_v9  ;;  %v50_v12 = vmul.f32 0.03125, %v46_v10  ;;  %v58_v24 = vsub.f32 %v29_v0, %v40_v9 }
  0xa6   :  { %v38_v13 = vpop.xlane.xlu0 %37 }
  0xa7   :  { %v54_v14 = vsub.f32 %v50_v12, %v52_v11  ;;  %v41_v15 = vmul.f32 0.03125, %v38_v13 }
  0xa8   :  { %v49_v16 = vpop.xlane.xlu1 %48 }
  0xa9   :  { %v56_v17 = vmax.f32 %v54_v14, 0.0  ;;  %v53_v18 = vmul.f32 %v41_v15, %v41_v15  ;;  %v51_v19 = vmul.f32 0.03125, %v49_v16  ;;  %v59_v29 = vsub.f32 %v30_v1, %v41_v15 }
  0xab   :  { %v60_v20 = vadd.f32 1e-05, %v56_v17  ;;  %v55_v21 = vsub.f32 %v51_v19, %v53_v18 }
  0xad   :  { %108 = vrsqrt.f32 %v60_v20  ;;  %v57_v22 = vmax.f32 %v55_v21, 0.0 }
  0xaf   :  { %v61_v23 = vadd.f32 1e-05, %v57_v22 }
  0xb1   :  { %110 = vrsqrt.f32 %v61_v23 }
  0xb7   :  { %v109_v25 = vpop.eup %108 }
  0xb8   :  { %v64_v27 = vmul.f32 %v109_v25, %v58_v24 }
  0xba   :  { %v72_v30 = vmul.f32 %v102_v26, %v64_v27 }
  0xbb   :  { %v111_v31 = vpop.eup %110 }
  0xbc   :  { %v65_v32 = vmul.f32 %v111_v31, %v59_v29  ;;  %v81_v33 = vadd.f32 %v103_v28, %v72_v30 }
  0xbe   :  { %v73_v34 = vmul.f32 %v102_v26, %v65_v32  ;;  %83 = vst.msk [vmem:[#allocation5] sm:$0xff] %vm32_vm0, %v81_v33 }
  0xc0   :  { %v82_v35 = vadd.f32 %v103_v28, %v73_v34 }
  0xc2   :  { %84 = vst.msk [vmem:[#allocation5 + $0x8] sm:$0xff] %vm32_vm0, %v82_v35 }
  0xc3   :  { %145 = shalt.err (!%p142_p12)
}
  0xc4   :  { %s146_s5 = scalar_lea.hbm %s229_s3, 256 }
  0xc5   :  { %p147_p13 = scmp.ne.s32.totalorder %s229_s3, %s146_s5  ;;  %p150_p0 = scmp.lt.u32.totalorder %s146_s5, %s229_s3 }
  0xc7   :  { %p152_p1 = pnand %p150_p0, %p147_p13 }
  0xc9   :  { %155 = shalt.err (!%p152_p1)
}
  0xca   :  { %96 = dma.vmem_to_hbm [thread:$0]  %s91_s30, 256, %s229_s3, [#allocation4], %s161_s22, %s161_s22, %s162_s23  }
  0xcb   :  { %158 = dma.done.wait [#allocation4], 256  }
  0xcc   :  { %159 = vsyncadd [#allocation4], 4294967040 }
  0xcd   :  { %100 = vsyncpa [#allocation3], 1 }
  0xce   :  { %101 = vsyncpa [#allocation4], 1 }

</bundles_post_ra>
